<compile_context>
chip_gen: v6e
topology: v6e:2x2x1
jax: 0.10.0
libtpu: 0.0.40
codegen_flags: <defaults>
</compile_context>

<pallas_src>
import functools

import jax
import jax.numpy as jnp
from jax.experimental import pallas as pl
from jax.experimental.pallas import tpu as pltpu

LANES = 128


def _round_up(x, m):
    return (x + m - 1) // m * m


def _late_fusion_kernel(x_ref, w_ref, tail_ref, out_ref, *, M, H, P):
    # x_ref    : (TB, M*H)  batch tile of modalities, feature-flattened (lanes)
    # w_ref    : (1,  M*H)  classifier weights, flattened to match x's lanes
    # tail_ref : (Rp, P)    packed small params (one vreg-sized slab):
    #              row 0       -> classifier biases   b_cls  (lanes 0..M-1)
    #              rows 1..M   -> fusion weight rows  wf.T[m] (lanes 0..C-1)
    #              row M+1     -> fusion bias         b_fuse (lanes 0..C-1)
    # out_ref  : (TB, P)    fused logits, lane-padded to P=128 (dense store)
    x = x_ref[...]                       # f32 already; no redundant cast
    w = w_ref[...]
    prod = x * w                         # (TB, M*H)  VPU elementwise

    tail = tail_ref[...]                 # (Rp, P)
    b_cls = tail[0:1, :]                 # (1, P) classifier biases on lanes
    bf = tail[M + 1:M + 2, :]            # (1, P) fusion bias on lanes

    tb = x.shape[0]
    # Start the accumulator at the (lane-padded) fusion bias.
    acc = jnp.broadcast_to(bf, (tb, P))  # hoisted once, not per-iteration

    # Stage 1 + stage 2 fused, unrolled over the few static modalities.
    # Everything lives on VPU/XLU; the tiny (M x C) fusion never hits the MXU.
    for m in range(M):
        # classifier m: per-row dot(x_m, w_m) via lane-slice reduce
        s = jnp.sum(prod[:, m * H:(m + 1) * H], axis=-1, keepdims=True)  # (TB,1)
        s = s + b_cls[:, m:m + 1]                                        # + bias
        acc = acc + s * tail[1 + m:2 + m, :]                             # rank-1 update
    out_ref[...] = acc


def late_fusion(modalities, w_cls, b_cls, w_fuse, b_fuse, *, block_b=128):
    """Batched late fusion.

    modalities : (B, M, H) f32 - per-sample stack of M modality feature vectors
    w_cls      : (M, H)        - per-modality Linear(H->1) weights
    b_cls      : (M,)          - per-modality classifier biases
    w_fuse     : (C, M)        - fusion Linear(M->C) weight
    b_fuse     : (C,)          - fusion bias
    returns    : (B, C) f32 fused logits
    """
    B, M, H = modalities.shape
    C = w_fuse.shape[0]
    P = LANES
    # TODO(synk): tile the fusion/lane dims if C or M ever exceed 128 lanes.
    assert C <= P and M <= P

    F = M * H
    TB = min(block_b, _round_up(B, 8))
    Bp = _round_up(B, TB)

    x2 = modalities.reshape(B, F).astype(jnp.float32)
    if Bp != B:
        x2 = jnp.pad(x2, ((0, Bp - B), (0, 0)))

    w_flat = w_cls.reshape(1, F).astype(jnp.float32)

    # Consolidate all tiny params into one lane-major (Rp, 128) slab -> 1 DMA.
    Rp = _round_up(M + 2, 8)
    tail = jnp.zeros((Rp, P), jnp.float32)
    tail = tail.at[0, :M].set(b_cls.reshape(M).astype(jnp.float32))
    tail = tail.at[1:1 + M, :C].set(w_fuse.T.astype(jnp.float32))
    tail = tail.at[1 + M, :C].set(b_fuse.reshape(C).astype(jnp.float32))

    kernel = functools.partial(_late_fusion_kernel, M=M, H=H, P=P)
    out_padded = pl.pallas_call(
        kernel,
        out_shape=jax.ShapeDtypeStruct((Bp, P), jnp.float32),
        grid=(Bp // TB,),
        in_specs=[
            pl.BlockSpec((TB, F), lambda i: (i, 0)),   # batch-tiled modalities
            pl.BlockSpec((1, F), lambda i: (0, 0)),    # classifier weights
            pl.BlockSpec((Rp, P), lambda i: (0, 0)),   # packed small params
        ],
        out_specs=pl.BlockSpec((TB, P), lambda i: (i, 0)),
        compiler_params=pltpu.CompilerParams(
            dimension_semantics=("parallel",)),        # megacore-shardable
    )(x2, w_flat, tail)

    return out_padded[:B, :C]


if __name__ == "__main__":
    B = 256    # batch of samples pushed through late fusion
    M = 3      # number of modalities
    H = 32     # per-modality feature size
    C = 4      # fused output size

    key = jax.random.PRNGKey(0)
    k_x, k_w, k_b, k_wf, k_bf = jax.random.split(key, 5)

    modalities = jax.random.normal(k_x, (B, M, H), dtype=jnp.float32)
    w_cls = jax.random.normal(k_w, (M, H), dtype=jnp.float32) * 0.1
    b_cls = jax.random.normal(k_b, (M,), dtype=jnp.float32) * 0.1
    w_fuse = jax.random.normal(k_wf, (C, M), dtype=jnp.float32) * 0.1
    b_fuse = jax.random.normal(k_bf, (C,), dtype=jnp.float32) * 0.1

    out = late_fusion(modalities, w_cls, b_cls, w_fuse, b_fuse)
    out = jax.block_until_ready(out)

    # Pure-JAX reference (same per-sample semantics as the PyTorch module).
    emb_ref = jnp.einsum("bmh,mh->bm", modalities, w_cls) + b_cls[None, :]
    ref = emb_ref @ w_fuse.T + b_fuse[None, :]
    assert out.shape == ref.shape
    assert jnp.allclose(out, ref, atol=1e-4, rtol=1e-4)

    print("KERNEL_OK")
</pallas_src>

<mosaic_0001>
module attributes {stable_mosaic.version = 11 : i64} {
  func.func @_late_fusion_kernel(%arg0: i32, %arg1: memref<128x96xf32, #tpu.memory_space<vmem>>, %arg2: memref<1x96xf32, #tpu.memory_space<vmem>>, %arg3: memref<8x128xf32, #tpu.memory_space<vmem>>, %arg4: memref<128x128xf32, #tpu.memory_space<vmem>>) attributes {dimension_semantics = [#tpu.dimension_semantics<parallel>], iteration_bounds = array<i64: 2>, scalar_prefetch = 0 : i64, scratch_operands = 0 : i64, tpu.core_type = #tpu.core_type<tc>, window_params = [{transform_indices = @transform_0, window_bounds = array<i64: 128, 96>}, {pipeline_mode = #tpu.pipeline_mode<synchronous>, transform_indices = @transform_1, window_bounds = array<i64: 1, 96>}, {pipeline_mode = #tpu.pipeline_mode<synchronous>, transform_indices = @transform_2, window_bounds = array<i64: 8, 128>}, {transform_indices = @transform_3, window_bounds = array<i64: 128, 128>}]} {
    %c0 = arith.constant 0 : index
    %c0_0 = arith.constant 0 : index
    %0 = vector.load %arg1[%c0, %c0_0] : memref<128x96xf32, #tpu.memory_space<vmem>>, vector<128x96xf32>
    %c0_1 = arith.constant 0 : index
    %c0_2 = arith.constant 0 : index
    %1 = vector.load %arg2[%c0_1, %c0_2] : memref<1x96xf32, #tpu.memory_space<vmem>>, vector<1x96xf32>
    %2 = vector.broadcast %1 : vector<1x96xf32> to vector<128x96xf32>
    %3 = arith.mulf %0, %2 : vector<128x96xf32>
    %c0_3 = arith.constant 0 : index
    %c0_4 = arith.constant 0 : index
    %4 = vector.load %arg3[%c0_3, %c0_4] : memref<8x128xf32, #tpu.memory_space<vmem>>, vector<8x128xf32>
    %5 = vector.extract_strided_slice %4 {offsets = [0, 0], sizes = [1, 128], strides = [1, 1]} : vector<8x128xf32> to vector<1x128xf32>
    %6 = vector.extract_strided_slice %4 {offsets = [4, 0], sizes = [1, 128], strides = [1, 1]} : vector<8x128xf32> to vector<1x128xf32>
    %7 = vector.shape_cast %6 : vector<1x128xf32> to vector<1x128xf32>
    %8 = vector.broadcast %7 : vector<1x128xf32> to vector<128x128xf32>
    %9 = vector.extract_strided_slice %3 {offsets = [0, 0], sizes = [128, 32], strides = [1, 1]} : vector<128x96xf32> to vector<128x32xf32>
    %cst = arith.constant dense<0.000000e+00> : vector<128xf32>
    %10 = vector.multi_reduction <add>, %9, %cst [1] : vector<128x32xf32> to vector<128xf32>
    %11 = vector.shape_cast %10 : vector<128xf32> to vector<128x1xf32>
    %12 = vector.extract_strided_slice %5 {offsets = [0, 0], sizes = [1, 1], strides = [1, 1]} : vector<1x128xf32> to vector<1x1xf32>
    %13 = vector.broadcast %12 : vector<1x1xf32> to vector<128x1xf32>
    %14 = arith.addf %11, %13 : vector<128x1xf32>
    %15 = vector.extract_strided_slice %4 {offsets = [1, 0], sizes = [1, 128], strides = [1, 1]} : vector<8x128xf32> to vector<1x128xf32>
    %16 = vector.broadcast %14 : vector<128x1xf32> to vector<128x128xf32>
    %17 = vector.broadcast %15 : vector<1x128xf32> to vector<128x128xf32>
    %18 = arith.mulf %16, %17 : vector<128x128xf32>
    %19 = arith.addf %8, %18 : vector<128x128xf32>
    %20 = vector.extract_strided_slice %3 {offsets = [0, 32], sizes = [128, 32], strides = [1, 1]} : vector<128x96xf32> to vector<128x32xf32>
    %cst_5 = arith.constant dense<0.000000e+00> : vector<128xf32>
    %21 = vector.multi_reduction <add>, %20, %cst_5 [1] : vector<128x32xf32> to vector<128xf32>
    %22 = vector.shape_cast %21 : vector<128xf32> to vector<128x1xf32>
    %23 = vector.extract_strided_slice %5 {offsets = [0, 1], sizes = [1, 1], strides = [1, 1]} : vector<1x128xf32> to vector<1x1xf32>
    %24 = vector.broadcast %23 : vector<1x1xf32> to vector<128x1xf32>
    %25 = arith.addf %22, %24 : vector<128x1xf32>
    %26 = vector.extract_strided_slice %4 {offsets = [2, 0], sizes = [1, 128], strides = [1, 1]} : vector<8x128xf32> to vector<1x128xf32>
    %27 = vector.broadcast %25 : vector<128x1xf32> to vector<128x128xf32>
    %28 = vector.broadcast %26 : vector<1x128xf32> to vector<128x128xf32>
    %29 = arith.mulf %27, %28 : vector<128x128xf32>
    %30 = arith.addf %19, %29 : vector<128x128xf32>
    %31 = vector.extract_strided_slice %3 {offsets = [0, 64], sizes = [128, 32], strides = [1, 1]} : vector<128x96xf32> to vector<128x32xf32>
    %cst_6 = arith.constant dense<0.000000e+00> : vector<128xf32>
    %32 = vector.multi_reduction <add>, %31, %cst_6 [1] : vector<128x32xf32> to vector<128xf32>
    %33 = vector.shape_cast %32 : vector<128xf32> to vector<128x1xf32>
    %34 = vector.extract_strided_slice %5 {offsets = [0, 2], sizes = [1, 1], strides = [1, 1]} : vector<1x128xf32> to vector<1x1xf32>
    %35 = vector.broadcast %34 : vector<1x1xf32> to vector<128x1xf32>
    %36 = arith.addf %33, %35 : vector<128x1xf32>
    %37 = vector.extract_strided_slice %4 {offsets = [3, 0], sizes = [1, 128], strides = [1, 1]} : vector<8x128xf32> to vector<1x128xf32>
    %38 = vector.broadcast %36 : vector<128x1xf32> to vector<128x128xf32>
    %39 = vector.broadcast %37 : vector<1x128xf32> to vector<128x128xf32>
    %40 = arith.mulf %38, %39 : vector<128x128xf32>
    %41 = arith.addf %30, %40 : vector<128x128xf32>
    %c0_7 = arith.constant 0 : index
    %c0_8 = arith.constant 0 : index
    %42 = vector.load %arg4[%c0_7, %c0_8] : memref<128x128xf32, #tpu.memory_space<vmem>>, vector<128x128xf32>
    tpu.vector_store %arg4[%c0_7, %c0_8], %41 {strides = array<i32>} : memref<128x128xf32, #tpu.memory_space<vmem>>, vector<128x128xf32>,
    return
  }
  func.func @transform_0(%arg0: i32) -> (i32, i32) {
    %c0_i32 = arith.constant 0 : i32
    %c0_i32_0 = arith.constant 0 : i32
    return %arg0, %c0_i32 : i32, i32
  }
  func.func @transform_1(%arg0: i32) -> (i32, i32) {
    %c0_i32 = arith.constant 0 : i32
    %c0_i32_0 = arith.constant 0 : i32
    %c0_i32_1 = arith.constant 0 : i32
    return %c0_i32, %c0_i32_0 : i32, i32
  }
  func.func @transform_2(%arg0: i32) -> (i32, i32) {
    %c0_i32 = arith.constant 0 : i32
    %c0_i32_0 = arith.constant 0 : i32
    %c0_i32_1 = arith.constant 0 : i32
    return %c0_i32, %c0_i32_0 : i32, i32
  }
  func.func @transform_3(%arg0: i32) -> (i32, i32) {
    %c0_i32 = arith.constant 0 : i32
    %c0_i32_0 = arith.constant 0 : i32
    return %arg0, %c0_i32 : i32, i32
  }
}

</mosaic_0001>

<bundles_post_ra>
// kernel: tpu_custom_call.1
= control target key start
LH: loop header
LB: loop body
LE: loop exit
PB: predicated region body
PF: predicated region fallthrough
CT: control target
= control target key end

     0   :  { %8 = vsyncpa [#allocation3], 0  ;;  %s1668_s0 = inlined_call_operand.vmem [shape: f32[256,96], index: 0, kind: input, shape index: {}]   ;;  %s1669_s1 = inlined_call_operand.vmem [shape: f32[1,96], index: 1, kind: input, shape index: {}]   ;;  %s1670_s2 = inlined_call_operand.vmem [shape: f32[8,128], index: 2, kind: input, shape index: {}]   ;;  %s1671_s3 = inlined_call_operand.hbm [shape: f32[256,128], index: 3, kind: output, shape index: {}]  }
   0x1   :  { %10 = vsyncpa [#allocation3 + $0x1], 0  ;;  %s1121_s12 = smov 0   ;;  %s1123_s13 = smov 0  }
   0x2   :  { %s1125_s14 = smov 0   ;;  %s1127_s15 = smov 0  }
   0x3 LB: > { %s1142_s16 = sadd.s32 4294967295, %s1091_s15   ;;  %s965_s17 = sadd.s32 4294967294, %s1091_s15   ;;  %s1091_s15 = sphi %s1127_s15, %s1677_s15   ;;  %s1087_s14 = sphi %s1125_s14, %s1676_s14   ;;  %s1083_s13 = sphi %s1123_s13, %s1675_s13   ;;  %s1079_s12 = sphi %s1121_s12, %s1674_s12  }
   0x4   : > { %s1146_s18 = sadd.s32 1, %s1091_s15   ;;  %s91_s19 = sadd.s32 1, %s1087_s14 }
   0x5   : > { %s88_s20 = ssub.s32 %s1091_s15, %s1146_s18  ;;  %p101_p0 = scmp.ne.s32.totalorder %s1087_s14, %s1083_s13 }
   0x6   : > { %p89_p1 = scmp.eq.s32.totalorder %s88_s20, 0  ;;  %p102_p2 = scmp.eq.s32.totalorder %s1142_s16, 1 }
   0x7   : > { %p107_p3 = scmp.ne.s32.totalorder %s1083_s13, %s1079_s12  ;;  %p108_p4 = scmp.eq.s32.totalorder %s965_s17, 1 }
   0x8   : > { %s1157_s21 = scalar_select %p89_p1, %s1087_s14, %s91_s19  }
   0x9   : > { %p1159_p5 = por %p102_p2, %p101_p0  ;;  %p1163_p6 = por %p108_p4, %p107_p3 }
   0xa   : > { %p968_p7 = scmp.ge.s32.totalorder %s1091_s15, 1  ;;  %p141_p8 = scmp.lt.s32.totalorder %s1091_s15, 3 }
   0xc   : > { %p142_p9 = pnand %p968_p7, %p141_p8 }
   0xd   : > { %s970_s24 = sshll.u32 (!%p142_p9), %s1142_s16, 4  ;;  %s1094_s4 = smov (!%p142_p9), 96  }
   0xe   : > { %145 = sbr.rel (%p142_p9) target bundleno = 743 (0x2e7), region = 32  ;;  %p166_p10 = scmp.lt.s32.totalorder (!%p142_p9), %s970_s24, 31 }
   0xf   : > { %s1095_s7 = smov (!%p142_p9), 64   ;;  %s162_s8 = sand.u32 (!%p142_p9), 1, %s1083_s13  }
  0x10   : > { %s969_s9 = sshll.u32 (!%p142_p9), %s162_s8, 7  ;;  %s978_s11 = sshll.u32 (!%p142_p9), %s1142_s16, 11 }
  0x11   : > { %s1519_s10 = scalar_lea.vmem (!%p142_p9), [#allocation2], %s969_s9  ;;  %s1628_s16 = scalar_lea.sflag (!%p142_p9), [#allocation3], %s162_s8 }
  0x12   : > { %s903_s17 = sshll.u32 (!%p142_p9), %s1519_s10, 4  ;;  %s1098_s26 = smov (!%p142_p9), [#allocation2]   ;;  %s1622_s17 = int_to_ptr.vmem [resolvable:$true] %s903_s17 }
  0x13   : > { %s1679_s24 = smov (!%p166_p10, %s970_s24), 31  ;;  %v1173_v0 = vld [vmem:[%s1669_s1] ss:$0 sm:$0xff]  ;;  %vm216_vm0 = vcmask 261120   ;;  %v1093_v37 = vmov 0   ;;  %v212_v50 = vlaneseq  ;;  %s1035_s27 = sshll.u32 %s1098_s26, 4  ;;  %s1036_s27 = int_to_ptr.vmem [resolvable:$false] %s1035_s27 }
  0x14   : > { %s971_s25 = sshll.u32 %s1679_s24, 3  ;;  %1025 = vset.pattern.permute.xlu1 %v1093_v37  ;;  %1026 = vset.pattern.permute.xlu0 %v1093_v37  ;;  %v1298_v53 = vld [vmem:[%s1670_s2] sm:$0xff]  ;;  %s1620_s24 = scalar_lea.hbm %s1671_s3, %s978_s11 }
  0x15   : > { %s1178_s30 = scalar_lea.vmem %s1668_s0, %s971_s25  ;;  %v1292_v51 = vshrl.u32 %v212_v50, 7  ;;  %s1031_s25 = scalar_lea.vmem %s1622_s17, 2048 }
  0x16   : > { %v172_v1 = vld [vmem:[%s1178_s30] sm:$0xff]  ;;  %v173_v2 = vld [vmem:[%s1178_s30 + $0x8] sm:$0xff]  ;;  %v174_v3 = vld [vmem:[%s1178_s30 + $0x10] sm:$0xff]  ;;  %p1032_p11 = scmp.ne.s32.totalorder %s1622_s17, %s1031_s25  ;;  %s1037_s28 = scalar_lea.vmem %s1036_s27, 4096 }
  0x17   : > { %v1184_v4 = vmul.f32 %v1173_v0, %v172_v1  ;;  %v1187_v5 = vmul.f32 %v1173_v0, %v173_v2  ;;  %v1190_v6 = vmul.f32 %v1173_v0, %v174_v3  ;;  %v175_v7 = vld [vmem:[%s1178_s30 + $0x18] sm:$0xff]  ;;  %v176_v8 = vld [vmem:[%s1178_s30 + $0x20] sm:$0xff]  ;;  %v177_v10 = vld [vmem:[%s1178_s30 + $0x28] sm:$0xff]  ;;  %v267_v52 = vsub.s32 0, %v1292_v51  ;;  %p1038_p0 = scmp.lt.s32.totalorder %s1622_s17, %s1036_s27  ;;  %p1039_p1 = scmp.lt.s32.totalorder %s1037_s28, %s1031_s25 }
  0x18   : > { %v1195_v9 = vmul.f32 %v1173_v0, %v175_v7  ;;  %v1205_v14 = vmul.f32 %v1173_v0, %v176_v8  ;;  %v1210_v16 = vmul.f32 %v1173_v0, %v177_v10  ;;  %v178_v17 = vld [vmem:[%s1178_s30 + $0x30] sm:$0xff]  ;;  %v179_v18 = vld [vmem:[%s1178_s30 + $0x38] sm:$0xff]  ;;  %v180_v23 = vld [vmem:[%s1178_s30 + $0x40] sm:$0xff]  ;;  %p1033_p12 = pnand %p1032_p11, %p1159_p5 }
  0x19   : > { %v217_v11 = vsel %vm216_vm0, %v1184_v4, 0.0  ;;  %v223_v12 = vsel %vm216_vm0, %v1190_v6, 0.0  ;;  %v220_v13 = vsel %vm216_vm0, %v1187_v5, 0.0  ;;  %v1217_v20 = vmul.f32 %v1173_v0, %v178_v17  ;;  %v181_v24 = vld [vmem:[%s1178_s30 + $0x48] sm:$0xff]  ;;  %v182_v29 = vld [vmem:[%s1178_s30 + $0x50] sm:$0xff]  ;;  %v183_v30 = vld [vmem:[%s1178_s30 + $0x58] sm:$0xff]  ;;  %p1040_p2 = por %p1039_p1, %p1038_p0 }
  0x1a   : > { %218 = vadd.xlane.f32.xlu0 %v217_v11  ;;  %224 = vadd.xlane.f32.xlu1 %v223_v12  ;;  %v226_v15 = vsel %vm216_vm0, %v1195_v9, 0.0  ;;  %v229_v19 = vsel %vm216_vm0, %v1205_v14, 0.0  ;;  %v232_v21 = vsel %vm216_vm0, %v1210_v16, 0.0  ;;  %v1222_v22 = vmul.f32 %v1173_v0, %v179_v18  ;;  %v184_v35 = vld [vmem:[%s1178_s30 + $0x60] sm:$0xff]  ;;  %v185_v36 = vld [vmem:[%s1178_s30 + $0x68] sm:$0xff]  ;;  %v186_v42 = vld [vmem:[%s1178_s30 + $0x70] sm:$0xff]  ;;  %p1034_p13 = pneg %p1033_p12 }
  0x1b   : > { %v235_v25 = vsel %vm216_vm0, %v1217_v20, 0.0  ;;  %v1229_v26 = vmul.f32 %v1173_v0, %v180_v23  ;;  %v1234_v28 = vmul.f32 %v1173_v0, %v181_v24  ;;  %v1241_v32 = vmul.f32 %v1173_v0, %v182_v29  ;;  %v187_v43 = vld [vmem:[%s1178_s30 + $0x78] sm:$0xff] }
  0x1c   : > { %v238_v27 = vsel %vm216_vm0, %v1222_v22, 0.0  ;;  %v1246_v34 = vmul.f32 %v1173_v0, %v183_v30  ;;  %v1253_v39 = vmul.f32 %v1173_v0, %v184_v35  ;;  %v1258_v41 = vmul.f32 %v1173_v0, %v185_v36  ;;  %p1041_p3 = pnand %p1040_p2, %p1034_p13 }
  0x1d   : > { %v241_v31 = vsel %vm216_vm0, %v1229_v26, 0.0  ;;  %v244_v33 = vsel %vm216_vm0, %v1234_v28, 0.0  ;;  %v247_v38 = vsel %vm216_vm0, %v1241_v32, 0.0  ;;  %v1265_v45 = vmul.f32 %v1173_v0, %v186_v42 }
  0x1e   : > { %221 = vadd.xlane.f32.xlu0 %v220_v13  ;;  %227 = vadd.xlane.f32.xlu1 %v226_v15  ;;  %v250_v40 = vsel %vm216_vm0, %v1246_v34, 0.0  ;;  %v253_v44 = vsel %vm216_vm0, %v1253_v39, 0.0  ;;  %v256_v46 = vsel %vm216_vm0, %v1258_v41, 0.0  ;;  %v1270_v47 = vmul.f32 %v1173_v0, %v187_v43 }
  0x1f   : > { %v259_v48 = vsel %vm216_vm0, %v1265_v45, 0.0  ;;  %v1301_v56 = vrot.slane %v1298_v53, %v267_v52 }
  0x20   : > { %v262_v49 = vsel %vm216_vm0, %v1270_v47, 0.0 }
  0x22   : > { %230 = vadd.xlane.f32.xlu0 %v229_v19  ;;  %233 = vadd.xlane.f32.xlu1 %v232_v21 }
  0x26   : > { %236 = vadd.xlane.f32.xlu0 %v235_v25  ;;  %239 = vadd.xlane.f32.xlu1 %v238_v27 }
  0x2a   : > { %242 = vadd.xlane.f32.xlu0 %v241_v31  ;;  %245 = vadd.xlane.f32.xlu1 %v244_v33 }
  0x2e   : > { %248 = vadd.xlane.f32.xlu0 %v247_v38  ;;  %251 = vadd.xlane.f32.xlu1 %v250_v40 }
  0x32   : > { %254 = vadd.xlane.f32.xlu0 %v253_v44  ;;  %257 = vadd.xlane.f32.xlu1 %v256_v46 }
  0x36   : > { %260 = vadd.xlane.f32.xlu0 %v259_v48  ;;  %263 = vadd.xlane.f32.xlu1 %v262_v49 }
  0x47   : > { %417 = vrot.lane.b32.xlu1 %v1184_v4, %s1094_s4 }
  0x4b   : > { %421 = vrot.lane.b32.xlu1 %v1190_v6, %s1094_s4 }
  0x4c   : > { %419 = vrot.lane.b32.xlu0 %v1187_v5, %s1094_s4 }
  0x4f   : > { %425 = vrot.lane.b32.xlu1 %v1205_v14, %s1094_s4 }
  0x50   : > { %423 = vrot.lane.b32.xlu0 %v1195_v9, %s1094_s4 }
  0x53   : > { %429 = vrot.lane.b32.xlu1 %v1217_v20, %s1094_s4 }
  0x54   : > { %427 = vrot.lane.b32.xlu0 %v1210_v16, %s1094_s4 }
  0x57   : > { %433 = vrot.lane.b32.xlu1 %v1229_v26, %s1094_s4 }
  0x58   : > { %431 = vrot.lane.b32.xlu0 %v1222_v22, %s1094_s4 }
  0x5b   : > { %437 = vrot.lane.b32.xlu1 %v1241_v32, %s1094_s4 }
  0x5c   : > { %435 = vrot.lane.b32.xlu0 %v1234_v28, %s1094_s4 }
  0x5f   : > { %441 = vrot.lane.b32.xlu1 %v1253_v39, %s1094_s4 }
  0x60   : > { %439 = vrot.lane.b32.xlu0 %v1246_v34, %s1094_s4 }
  0x63   : > { %445 = vrot.lane.b32.xlu1 %v1265_v45, %s1094_s4 }
  0x64   : > { %443 = vrot.lane.b32.xlu0 %v1258_v41, %s1094_s4 }
  0x68   : > { %447 = vrot.lane.b32.xlu0 %v1270_v47, %s1094_s4 }
  0xa3   : > { %v219_v54 = vpop.xlane.xlu0 %218  ;;  %v225_v55 = vpop.xlane.xlu1 %224 }
  0xa4   : > { %v271_v59 = vadd.f32 %v1301_v56, %v225_v55  ;;  %v269_v27 = vadd.f32 %v1301_v56, %v219_v54 }
  0xa7   : > { %v222_v57 = vpop.xlane.xlu0 %221  ;;  %v228_v61 = vpop.xlane.xlu1 %227 }
  0xa8   : > { %v270_v58 = vadd.f32 %v1301_v56, %v222_v57  ;;  %v272_v62 = vadd.f32 %v1301_v56, %v228_v61 }
  0xaa   : > { %292 = vperm.xlu1 %1025, %v270_v58  }
  0xab   : > { %v231_v60 = vpop.xlane.xlu0 %230  ;;  %v234_v1 = vpop.xlane.xlu1 %233 }
  0xac   : > { %v273_v2 = vadd.f32 %v1301_v56, %v231_v60  ;;  %v274_v3 = vadd.f32 %v1301_v56, %v234_v1 }
  0xae   : > { %297 = vperm.xlu1 %1025, %v271_v59  }
  0xaf   : > { %v237_v63 = vpop.xlane.xlu0 %236  ;;  %v240_v10 = vpop.xlane.xlu1 %239 }
  0xb0   : > { %v275_v11 = vadd.f32 %v1301_v56, %v237_v63  ;;  %v276_v12 = vadd.f32 %v1301_v56, %v240_v10 }
  0xb2   : > { %302 = vperm.xlu1 %1025, %v272_v62  }
  0xb3   : > { %v243_v0 = vpop.xlane.xlu0 %242  ;;  %v246_v24 = vpop.xlane.xlu1 %245 }
  0xb4   : > { %v277_v17 = vadd.f32 %v1301_v56, %v243_v0  ;;  %v278_v29 = vadd.f32 %v1301_v56, %v246_v24 }
  0xb6   : > { %307 = vperm.xlu1 %1025, %v273_v2  }
  0xb7   : > { %v249_v7 = vpop.xlane.xlu0 %248  ;;  %v252_v25 = vpop.xlane.xlu1 %251 }
  0xb8   : > { %v279_v19 = vadd.f32 %v1301_v56, %v249_v7  ;;  %v280_v31 = vadd.f32 %v1301_v56, %v252_v25 }
  0xba   : > { %312 = vperm.xlu1 %1025, %v274_v3  }
  0xbb   : > { %v255_v8 = vpop.xlane.xlu0 %254  ;;  %v258_v30 = vpop.xlane.xlu1 %257 }
  0xbc   : > { %v281_v21 = vadd.f32 %v1301_v56, %v255_v8  ;;  %v282_v33 = vadd.f32 %v1301_v56, %v258_v30 }
  0xbe   : > { %317 = vperm.xlu1 %1025, %v275_v11  }
  0xbf   : > { %v261_v13 = vpop.xlane.xlu0 %260  ;;  %v264_v35 = vpop.xlane.xlu1 %263 }
  0xc0   : > { %v283_v23 = vadd.f32 %v1301_v56, %v261_v13  ;;  %v284_v36 = vadd.f32 %v1301_v56, %v264_v35 }
  0xc2   : > { %322 = vperm.xlu1 %1025, %v276_v12  }
  0xc3   : > { %v420_v15 = vpop.permute.xlu0 %419  ;;  %v418_v40 = vpop.permute.xlu1 %417 }
  0xc4   : > { %v468_v18 = vsel %vm216_vm0, %v420_v15, 0.0  ;;  %v465_v42 = vsel %vm216_vm0, %v418_v40, 0.0 }
  0xc5   : > { %469 = vadd.xlane.f32.xlu0 %v468_v18 }
  0xc6   : > { %327 = vperm.xlu1 %1025, %v277_v17  }
  0xc7   : > { %v424_v37 = vpop.permute.xlu0 %423  ;;  %v422_v46 = vpop.permute.xlu1 %421 }
  0xc8   : > { %v474_v44 = vsel %vm216_vm0, %v424_v37, 0.0  ;;  %v471_v59 = vsel %vm216_vm0, %v422_v46, 0.0 }
  0xca   : > { %337 = vperm.xlu1 %1025, %v279_v19  }
  0xcb   : > { %v428_v38 = vpop.permute.xlu0 %427  ;;  %v426_v50 = vpop.permute.xlu1 %425 }
  0xcc   : > { %v480_v49 = vsel %vm216_vm0, %v428_v38, 0.0  ;;  %v477_v62 = vsel %vm216_vm0, %v426_v50, 0.0 }
  0xce   : > { %347 = vperm.xlu1 %1025, %v281_v21  }
  0xcf   : > { %v432_v43 = vpop.permute.xlu0 %431  ;;  %v430_v57 = vpop.permute.xlu1 %429 }
  0xd0   : > { %v486_v52 = vsel %vm216_vm0, %v432_v43, 0.0  ;;  %v483_v1 = vsel %vm216_vm0, %v430_v57, 0.0 }
  0xd2   : > { %357 = vperm.xlu1 %1025, %v283_v23  }
  0xd3   : > { %v436_v48 = vpop.permute.xlu0 %435  ;;  %v434_v61 = vpop.permute.xlu1 %433 }
  0xd4   : > { %v492_v55 = vsel %vm216_vm0, %v436_v48, 0.0  ;;  %v489_v7 = vsel %vm216_vm0, %v434_v61, 0.0 }
  0xd7   : > { %v440_v54 = vpop.permute.xlu0 %439  ;;  %v438_v3 = vpop.permute.xlu1 %437 }
  0xd8   : > { %v498_v60 = vsel %vm216_vm0, %v440_v54, 0.0  ;;  %v495_v10 = vsel %vm216_vm0, %v438_v3, 0.0 }
  0xdb   : > { %287 = vperm.xlu0 %1026, %v269_v27   ;;  %v444_v58 = vpop.permute.xlu0 %443  ;;  %v442_v8 = vpop.permute.xlu1 %441 }
  0xdc   : > { %v504_v63 = vsel %vm216_vm0, %v444_v58, 0.0  ;;  %v501_v11 = vsel %vm216_vm0, %v442_v8, 0.0 }
  0xdf   : > { %332 = vperm.xlu0 %1026, %v278_v29   ;;  %v448_v0 = vpop.permute.xlu0 %447  ;;  %v446_v12 = vpop.permute.xlu1 %445 }
  0xe0   : > { %v510_v2 = vsel %vm216_vm0, %v448_v0, 0.0  ;;  %v507_v13 = vsel %vm216_vm0, %v446_v12, 0.0 }
  0xe3   : > { %342 = vperm.xlu0 %1026, %v280_v31  }
  0xe7   : > { %352 = vperm.xlu0 %1026, %v282_v33  }
  0xeb   : > { %362 = vperm.xlu0 %1026, %v284_v36  }
  0xf6   : > { %466 = vadd.xlane.f32.xlu1 %v465_v42 }
  0xfa   : > { %475 = vadd.xlane.f32.xlu1 %v474_v44 }
  0xfe   : > { %481 = vadd.xlane.f32.xlu1 %v480_v49 }
 0x102   : > { %487 = vadd.xlane.f32.xlu1 %v486_v52 }
 0x106   : > { %493 = vadd.xlane.f32.xlu1 %v492_v55 }
 0x10a   : > { %472 = vadd.xlane.f32.xlu0 %v471_v59  ;;  %499 = vadd.xlane.f32.xlu1 %v498_v60 }
 0x10e   : > { %478 = vadd.xlane.f32.xlu0 %v477_v62  ;;  %505 = vadd.xlane.f32.xlu1 %v504_v63 }
 0x112   : > { %484 = vadd.xlane.f32.xlu0 %v483_v1  ;;  %511 = vadd.xlane.f32.xlu1 %v510_v2 }
 0x116   : > { %490 = vadd.xlane.f32.xlu0 %v489_v7 }
 0x11a   : > { %496 = vadd.xlane.f32.xlu0 %v495_v10 }
 0x11e   : > { %502 = vadd.xlane.f32.xlu0 %v501_v11 }
 0x122   : > { %508 = vadd.xlane.f32.xlu0 %v507_v13 }
 0x123   : > { %645 = vrot.lane.b32.xlu1 %v1184_v4, %s1095_s7 }
 0x125   : > { %v1344_v15 = vpop.permute.xlu1 %292 }
 0x127   : > { %647 = vrot.lane.b32.xlu1 %v1187_v5, %s1095_s7 }
 0x129   : > { %v1350_v4 = vpop.permute.xlu1 %297 }
 0x12b   : > { %651 = vrot.lane.b32.xlu1 %v1195_v9, %s1095_s7 }
 0x12d   : > { %v1353_v5 = vpop.permute.xlu1 %302 }
 0x12f   : > { %655 = vrot.lane.b32.xlu1 %v1210_v16, %s1095_s7 }
 0x131   : > { %v1357_v9 = vpop.permute.xlu1 %307 }
 0x133   : > { %659 = vrot.lane.b32.xlu1 %v1222_v22, %s1095_s7 }
 0x137   : > { %663 = vrot.lane.b32.xlu1 %v1234_v28, %s1095_s7 }
 0x138   : > { %649 = vrot.lane.b32.xlu0 %v1190_v6, %s1095_s7  ;;  %v1096_v6 = vmov 1  }
 0x139   : > { %1028 = vset.pattern.permute.xlu1 %v1096_v6  ;;  %1027 = vset.pattern.permute.xlu0 %v1096_v6 }
 0x13b   : > { %667 = vrot.lane.b32.xlu1 %v1246_v34, %s1095_s7 }
 0x13c   : > { %653 = vrot.lane.b32.xlu0 %v1205_v14, %s1095_s7  ;;  %v1359_v14 = vpop.permute.xlu1 %312 }
 0x13f   : > { %671 = vrot.lane.b32.xlu1 %v1258_v41, %s1095_s7 }
 0x140   : > { %657 = vrot.lane.b32.xlu0 %v1217_v20, %s1095_s7  ;;  %v1361_v16 = vpop.permute.xlu1 %317 }
 0x143   : > { %675 = vrot.lane.b32.xlu1 %v1270_v47, %s1095_s7 }
 0x144   : > { %661 = vrot.lane.b32.xlu0 %v1229_v26, %s1095_s7  ;;  %v1363_v20 = vpop.permute.xlu1 %322 }
 0x148   : > { %665 = vrot.lane.b32.xlu0 %v1241_v32, %s1095_s7  ;;  %v1365_v22 = vpop.permute.xlu1 %327 }
 0x14c   : > { %669 = vrot.lane.b32.xlu0 %v1253_v39, %s1095_s7  ;;  %v1367_v26 = vpop.permute.xlu1 %337 }
 0x14e   : > { %v1369_v28 = vpop.xlane.xlu0 %469 }
 0x150   : > { %673 = vrot.lane.b32.xlu0 %v1265_v45, %s1095_s7  ;;  %v1371_v32 = vpop.permute.xlu1 %347 }
 0x154   : > { %v1375_v39 = vpop.permute.xlu1 %357 }
 0x156   : > { %v1373_v34 = vpop.permute.xlu0 %287 }
 0x15a   : > { %v1377_v41 = vpop.permute.xlu0 %332 }
 0x15e   : > { %v1381_v47 = vpop.permute.xlu0 %342 }
 0x162   : > { %v1387_v19 = vpop.permute.xlu0 %352 }
 0x166   : > { %v1391_v23 = vpop.permute.xlu0 %362 }
 0x17f   : > { %v1379_v45 = vpop.xlane.xlu1 %466 }
 0x183   : > { %v1383_v17 = vpop.xlane.xlu1 %475 }
 0x187   : > { %v1385_v18 = vpop.xlane.xlu1 %481 }
 0x18b   : > { %v1389_v21 = vpop.xlane.xlu1 %487 }
 0x18f   : > { %v1393_v24 = vpop.xlane.xlu1 %493 }
 0x193   : > { %v1395_v25 = vpop.xlane.xlu1 %499  ;;  %v473_v27 = vpop.xlane.xlu0 %472 }
 0x197   : > { %v1397_v29 = vpop.xlane.xlu1 %505  ;;  %v479_v30 = vpop.xlane.xlu0 %478 }
 0x19b   : > { %v1399_v31 = vpop.xlane.xlu1 %511  ;;  %v1401_v33 = vpop.xlane.xlu0 %484 }
 0x19f   : > { %v646_v35 = vpop.permute.xlu1 %645  ;;  %v1403_v36 = vpop.xlane.xlu0 %490 }
 0x1a0   : > { %v693_v37 = vsel %vm216_vm0, %v646_v35, 0.0 }
 0x1a1   : > { %694 = vadd.xlane.f32.xlu0 %v693_v37 }
 0x1a3   : > { %v648_v38 = vpop.permute.xlu1 %647  ;;  %v1406_v40 = vpop.xlane.xlu0 %496 }
 0x1a4   : > { %v696_v42 = vsel %vm216_vm0, %v648_v38, 0.0 }
 0x1a5   : > { %697 = vadd.xlane.f32.xlu1 %v696_v42  ;;  %v514_v42 = vadd.f32 %v1369_v28, %v1301_v56  ;;  %v519_v28 = vadd.f32 %v1401_v33, %v1301_v56  ;;  %v526_v33 = vadd.f32 %v1397_v29, %v1301_v56 }
 0x1a7   : > { %v652_v43 = vpop.permute.xlu1 %651  ;;  %v1409_v44 = vpop.xlane.xlu0 %502 }
 0x1a8   : > { %v702_v57 = vsel %vm216_vm0, %v652_v43, 0.0  ;;  %v515_v43 = vadd.f32 %v473_v27, %v1301_v56  ;;  %v520_v27 = vadd.f32 %v1389_v21, %v1301_v56  ;;  %v525_v21 = vadd.f32 %v1409_v44, %v1301_v56 }
 0x1ab   : > { %v656_v46 = vpop.permute.xlu1 %655  ;;  %v1411_v48 = vpop.xlane.xlu0 %508 }
 0x1ac   : > { %v708_v49 = vsel %vm216_vm0, %v656_v46, 0.0  ;;  %v516_v46 = vadd.f32 %v1383_v17, %v1301_v56  ;;  %v521_v17 = vadd.f32 %v1403_v36, %v1301_v56  ;;  %v1097_v36 = vmov 2  }
 0x1ad   : > { %709 = vadd.xlane.f32.xlu1 %v708_v49  ;;  %v517_v49 = vadd.f32 %v479_v30, %v1301_v56  ;;  %v522_v30 = vadd.f32 %v1393_v24, %v1301_v56  ;;  %v527_v24 = vadd.f32 %v1411_v48, %v1301_v56 }
 0x1af   : > { %v660_v50 = vpop.permute.xlu1 %659  ;;  %v650_v52 = vpop.permute.xlu0 %649 }
 0x1b0   : > { %v714_v54 = vsel %vm216_vm0, %v660_v50, 0.0  ;;  %v699_v55 = vsel %vm216_vm0, %v650_v52, 0.0  ;;  %v518_v50 = vadd.f32 %v1385_v18, %v1301_v56  ;;  %v513_v52 = vadd.f32 %v1379_v45, %v1301_v56 }
 0x1b1   : > { %715 = vadd.xlane.f32.xlu1 %v714_v54  ;;  %700 = vadd.xlane.f32.xlu0 %v699_v55  ;;  %v523_v45 = vadd.f32 %v1406_v40, %v1301_v56  ;;  %v524_v18 = vadd.f32 %v1395_v25, %v1301_v56  ;;  %v528_v40 = vadd.f32 %v1399_v31, %v1301_v56 }
 0x1b3   : > { %v664_v58 = vpop.permute.xlu1 %663  ;;  %v654_v59 = vpop.permute.xlu0 %653 }
 0x1b4   : > { %v720_v60 = vsel %vm216_vm0, %v664_v58, 0.0  ;;  %v705_v61 = vsel %vm216_vm0, %v654_v59, 0.0 }
 0x1b5   : > { %721 = vadd.xlane.f32.xlu1 %v720_v60  ;;  %703 = vadd.xlane.f32.xlu0 %v702_v57 }
 0x1b7   : > { %v668_v62 = vpop.permute.xlu1 %667  ;;  %v658_v63 = vpop.permute.xlu0 %657 }
 0x1b8   : > { %v726_v0 = vsel %vm216_vm0, %v668_v62, 0.0  ;;  %v711_v1 = vsel %vm216_vm0, %v658_v63, 0.0 }
 0x1b9   : > { %727 = vadd.xlane.f32.xlu1 %v726_v0  ;;  %706 = vadd.xlane.f32.xlu0 %v705_v61 }
 0x1bb   : > { %v672_v2 = vpop.permute.xlu1 %671  ;;  %v662_v3 = vpop.permute.xlu0 %661 }
 0x1bc   : > { %v732_v7 = vsel %vm216_vm0, %v672_v2, 0.0  ;;  %v717_v8 = vsel %vm216_vm0, %v662_v3, 0.0 }
 0x1bd   : > { %733 = vadd.xlane.f32.xlu1 %v732_v7  ;;  %712 = vadd.xlane.f32.xlu0 %v711_v1 }
 0x1bf   : > { %v676_v10 = vpop.permute.xlu1 %675  ;;  %v666_v11 = vpop.permute.xlu0 %665 }
 0x1c0   : > { %v738_v12 = vsel %vm216_vm0, %v676_v10, 0.0  ;;  %v723_v13 = vsel %vm216_vm0, %v666_v11, 0.0 }
 0x1c1   : > { %739 = vadd.xlane.f32.xlu1 %v738_v12  ;;  %718 = vadd.xlane.f32.xlu0 %v717_v8 }
 0x1c3   : > { %v670_v6 = vpop.permute.xlu0 %669 }
 0x1c4   : > { %v729_v35 = vsel %vm216_vm0, %v670_v6, 0.0 }
 0x1c5   : > { %724 = vadd.xlane.f32.xlu0 %v723_v13 }
 0x1c7   : > { %v674_v37 = vpop.permute.xlu0 %673 }
 0x1c8   : > { %v735_v38 = vsel %vm216_vm0, %v674_v37, 0.0 }
 0x1c9   : > { %730 = vadd.xlane.f32.xlu0 %v729_v35 }
 0x1cd   : > { %736 = vadd.xlane.f32.xlu0 %v735_v38 }
 0x1d2   : > { %536 = vperm.xlu1 %1028, %v514_v42  }
 0x1d6   : > { %541 = vperm.xlu1 %1028, %v515_v43  }
 0x1da   : > { %546 = vperm.xlu1 %1028, %v516_v46  }
 0x1de   : > { %551 = vperm.xlu1 %1028, %v517_v49  }
 0x1e2   : > { %556 = vperm.xlu1 %1028, %v518_v50  }
 0x1e3   : > { %531 = vperm.xlu0 %1027, %v513_v52  }
 0x1e6   : > { %561 = vperm.xlu1 %1028, %v519_v28  }
 0x1e7   : > { %566 = vperm.xlu0 %1027, %v520_v27  }
 0x1ea   : > { %571 = vperm.xlu1 %1028, %v521_v17  }
 0x1eb   : > { %576 = vperm.xlu0 %1027, %v522_v30  }
 0x1ee   : > { %581 = vperm.xlu1 %1028, %v523_v45  }
 0x1ef   : > { %586 = vperm.xlu0 %1027, %v524_v18  }
 0x1f2   : > { %591 = vperm.xlu1 %1028, %v525_v21  }
 0x1f3   : > { %596 = vperm.xlu0 %1027, %v526_v33  }
 0x1f6   : > { %601 = vperm.xlu1 %1028, %v527_v24  }
 0x1f7   : > { %1030 = vset.pattern.permute.xlu0 %v1097_v36 }
 0x1fa   : > { %606 = vperm.xlu1 %1028, %v528_v40  }
 0x1fe   : > { %1029 = vset.pattern.permute.xlu1 %v1097_v36 }
 0x22a   : > { %v695_v25 = vpop.xlane.xlu0 %694 }
 0x22b   : > { %v741_v54 = vadd.f32 %v695_v25, %v1301_v56  ;;  %v611_v25 = vsub.s32 2, %v1292_v51 }
 0x22d   : > { %759 = vperm.xlu1 %1029, %v741_v54   ;;  %v214_v54 = vsub.s32 4, %v1292_v51 }
 0x22e   : > { %v698_v44 = vpop.xlane.xlu1 %697 }
 0x22f   : > { %v742_v29 = vadd.f32 %v698_v44, %v1301_v56 }
 0x231   : > { %764 = vperm.xlu0 %1030, %v742_v29   ;;  %v839_v29 = vsub.s32 3, %v1292_v51 }
 0x236   : > { %v710_v55 = vpop.xlane.xlu1 %709 }
 0x237   : > { %v746_v31 = vadd.f32 %v710_v55, %v1301_v56 }
 0x23a   : > { %v701_v57 = vpop.xlane.xlu0 %700  ;;  %v716_v58 = vpop.xlane.xlu1 %715 }
 0x23b   : > { %v743_v48 = vadd.f32 %v701_v57, %v1301_v56  ;;  %v748_v0 = vadd.f32 %v716_v58, %v1301_v56 }
 0x23d   : > { %769 = vperm.xlu1 %1029, %v743_v48   ;;  %v1497_v48 = vrot.slane %v1298_v53, %v611_v25 }
 0x23e   : > { %v704_v59 = vpop.xlane.xlu0 %703  ;;  %v722_v61 = vpop.xlane.xlu1 %721 }
 0x23f   : > { %v744_v60 = vadd.f32 %v704_v59, %v1301_v56  ;;  %v750_v7 = vadd.f32 %v722_v61, %v1301_v56  ;;  %v1503_v59 = vrot.slane %v1298_v53, %v214_v54 }
 0x241   : > { %774 = vperm.xlu1 %1029, %v744_v60  }
 0x242   : > { %v707_v62 = vpop.xlane.xlu0 %706  ;;  %v728_v3 = vpop.xlane.xlu1 %727 }
 0x243   : > { %v745_v63 = vadd.f32 %v707_v62, %v1301_v56  ;;  %v752_v11 = vadd.f32 %v728_v3, %v1301_v56 }
 0x245   : > { %784 = vperm.xlu1 %1029, %v746_v31   ;;  %779 = vperm.xlu0 %1030, %v745_v63   ;;  %v1507_v31 = vrot.slane %v1298_v53, %v839_v29 }
 0x246   : > { %v713_v1 = vpop.xlane.xlu0 %712  ;;  %v734_v12 = vpop.xlane.xlu1 %733 }
 0x247   : > { %v747_v2 = vadd.f32 %v713_v1, %v1301_v56  ;;  %v754_v35 = vadd.f32 %v734_v12, %v1301_v56 }
 0x249   : > { %794 = vperm.xlu1 %1029, %v748_v0   ;;  %789 = vperm.xlu0 %1030, %v747_v2  }
 0x24a   : > { %v719_v8 = vpop.xlane.xlu0 %718  ;;  %v740_v42 = vpop.xlane.xlu1 %739 }
 0x24b   : > { %v749_v10 = vadd.f32 %v719_v8, %v1301_v56  ;;  %v756_v43 = vadd.f32 %v740_v42, %v1301_v56 }
 0x24d   : > { %804 = vperm.xlu1 %1029, %v750_v7   ;;  %799 = vperm.xlu0 %1030, %v749_v10  }
 0x24e   : > { %v725_v13 = vpop.xlane.xlu0 %724  ;;  %v537_v50 = vpop.permute.xlu1 %536 }
 0x24f   : > { %v751_v6 = vadd.f32 %v725_v13, %v1301_v56  ;;  %v614_v63 = vmul.f32 %v1497_v48, %v537_v50 }
 0x251   : > { %814 = vperm.xlu1 %1029, %v752_v11   ;;  %809 = vperm.xlu0 %1030, %v751_v6  }
 0x252   : > { %v731_v37 = vpop.xlane.xlu0 %730  ;;  %v542_v52 = vpop.permute.xlu1 %541 }
 0x253   : > { %v753_v38 = vadd.f32 %v731_v37, %v1301_v56  ;;  %v615_v11 = vmul.f32 %v1497_v48, %v542_v52 }
 0x255   : > { %824 = vperm.xlu1 %1029, %v754_v35   ;;  %819 = vperm.xlu0 %1030, %v753_v38  }
 0x256   : > { %v737_v46 = vpop.xlane.xlu0 %736  ;;  %v547_v28 = vpop.permute.xlu1 %546 }
 0x257   : > { %v755_v49 = vadd.f32 %v737_v46, %v1301_v56  ;;  %v367_v56 = vsub.s32 1, %v1292_v51  ;;  %v616_v37 = vmul.f32 %v1497_v48, %v547_v28 }
 0x259   : > { %834 = vperm.xlu1 %1029, %v756_v43   ;;  %829 = vperm.xlu0 %1030, %v755_v49   ;;  %v1489_v44 = vrot.slane %v1298_v53, %v367_v56 }
 0x25a   : > { %v552_v27 = vpop.permute.xlu1 %551 }
 0x25b   : > { %v369_v57 = vmul.f32 %v1489_v44, %v1373_v34  ;;  %v370_v51 = vmul.f32 %v1489_v44, %v1344_v15  ;;  %v371_v10 = vmul.f32 %v1489_v44, %v1350_v4  ;;  %v372_v13 = vmul.f32 %v1489_v44, %v1353_v5 }
 0x25c   : > { %v373_v42 = vmul.f32 %v1489_v44, %v1357_v9  ;;  %v374_v4 = vmul.f32 %v1489_v44, %v1359_v14  ;;  %v617_v49 = vmul.f32 %v1497_v48, %v552_v27  ;;  %v375_v14 = vmul.f32 %v1489_v44, %v1361_v16 }
 0x25d   : > { %v385_v61 = vadd.f32 %v369_v57, %v1503_v59  ;;  %v386_v2 = vadd.f32 %v370_v51, %v1503_v59  ;;  %v387_v12 = vadd.f32 %v371_v10, %v1503_v59  ;;  %v388_v43 = vadd.f32 %v372_v13, %v1503_v59 }
 0x25e   : > { %v557_v17 = vpop.permute.xlu1 %556  ;;  %v532_v18 = vpop.permute.xlu0 %531  ;;  %v390_v9 = vadd.f32 %v374_v4, %v1503_v59  ;;  %v376_v56 = vmul.f32 %v1489_v44, %v1363_v20  ;;  %v377_v20 = vmul.f32 %v1489_v44, %v1365_v22  ;;  %v382_v4 = vmul.f32 %v1489_v44, %v1387_v19 }
 0x25f   : > { %v613_v60 = vmul.f32 %v1497_v48, %v532_v18  ;;  %v630_v7 = vadd.f32 %v614_v63, %v386_v2  ;;  %v631_v35 = vadd.f32 %v615_v11, %v387_v12  ;;  %v618_v50 = vmul.f32 %v1497_v48, %v557_v17 }
 0x260   : > { %v632_v52 = vadd.f32 %v616_v37, %v388_v43  ;;  %v389_v18 = vadd.f32 %v373_v42, %v1503_v59  ;;  %v392_v63 = vadd.f32 %v376_v56, %v1503_v59  ;;  %v381_v42 = vmul.f32 %v1489_v44, %v1371_v32 }
 0x261   : > { %v629_v0 = vadd.f32 %v613_v60, %v385_v61  ;;  %v634_v54 = vadd.f32 %v618_v50, %v390_v9  ;;  %v378_v61 = vmul.f32 %v1489_v44, %v1377_v41 }
 0x262   : > { %v1473_v30 = vpop.permute.xlu1 %561  ;;  %v567_v33 = vpop.permute.xlu0 %566  ;;  %v633_v27 = vadd.f32 %v617_v49, %v389_v18  ;;  %v397_v9 = vadd.f32 %v381_v42, %v1503_v59 }
 0x263   : > { %v619_v57 = vmul.f32 %v1497_v48, %v1473_v30  ;;  %v620_v60 = vmul.f32 %v1497_v48, %v567_v33 }
 0x266   : > { %v1475_v45 = vpop.permute.xlu1 %571  ;;  %v1481_v36 = vpop.permute.xlu0 %576 }
 0x267   : > { %v621_v33 = vmul.f32 %v1497_v48, %v1475_v45  ;;  %v379_v45 = vmul.f32 %v1489_v44, %v1367_v26 }
 0x269   : > { %v395_v43 = vadd.f32 %v379_v45, %v1503_v59 }
 0x26a   : > { %v1477_v21 = vpop.permute.xlu1 %581  ;;  %v1492_v55 = vpop.permute.xlu0 %586 }
 0x26b   : > { %v623_v37 = vmul.f32 %v1497_v48, %v1477_v21 }
 0x26e   : > { %v1479_v24 = vpop.permute.xlu1 %591  ;;  %v1514_v34 = vpop.permute.xlu0 %596 }
 0x26f   : > { %v625_v49 = vmul.f32 %v1497_v48, %v1479_v24  ;;  %v626_v50 = vmul.f32 %v1497_v48, %v1514_v34  ;;  %v383_v24 = vmul.f32 %v1489_v44, %v1375_v39  ;;  %v384_v34 = vmul.f32 %v1489_v44, %v1391_v23 }
 0x272   : > { %v1484_v40 = vpop.permute.xlu1 %601 }
 0x276   : > { %v1499_v58 = vpop.permute.xlu1 %606 }
 0x2a8   : > { %v760_v62 = vpop.permute.xlu1 %759 }
 0x2a9   : > { %v841_v1 = vmul.f32 %v1507_v31, %v760_v62  ;;  %v391_v62 = vadd.f32 %v375_v14, %v1503_v59  ;;  %v398_v14 = vadd.f32 %v382_v4, %v1503_v59 }
 0x2ab   : > { %v857_v3 = vadd.f32 %v841_v1, %v629_v0  ;;  %v622_v1 = vmul.f32 %v1497_v48, %v1481_v36  ;;  %v380_v36 = vmul.f32 %v1489_v44, %v1381_v47  ;;  %v399_v44 = vadd.f32 %v383_v24, %v1503_v59 }
 0x2ac   : > { %v765_v53 = vpop.permute.xlu0 %764 }
 0x2ad   : > { %873 = vst [vmem:[%s1519_s10] sm:$0xff] %v857_v3  ;;  %v842_v15 = vmul.f32 %v1507_v31, %v765_v53  ;;  %v635_v53 = vadd.f32 %v619_v57, %v391_v62  ;;  %v396_v21 = vadd.f32 %v380_v36, %v1503_v59  ;;  %v627_v57 = vmul.f32 %v1497_v48, %v1484_v40 }
 0x2af   : > { %v858_v8 = vadd.f32 %v842_v15, %v630_v7  ;;  %v636_v7 = vadd.f32 %v620_v60, %v392_v63  ;;  %v393_v15 = vadd.f32 %v377_v20, %v1503_v59  ;;  %v628_v60 = vmul.f32 %v1497_v48, %v1499_v58 }
 0x2b0   : > { %v643_v58 = vadd.f32 %v627_v57, %v399_v44 }
 0x2b1   : > { %874 = vst [vmem:[%s1519_s10 + $0x8] sm:$0xff] %v858_v8  ;;  %v394_v8 = vadd.f32 %v378_v61, %v1503_v59  ;;  %v637_v12 = vadd.f32 %v621_v33, %v393_v15 }
 0x2b3   : > { %v638_v13 = vadd.f32 %v622_v1, %v394_v8 }
 0x2b8   : > { %v770_v6 = vpop.permute.xlu1 %769 }
 0x2b9   : > { %v843_v38 = vmul.f32 %v1507_v31, %v770_v6 }
 0x2bb   : > { %v859_v46 = vadd.f32 %v843_v38, %v631_v35  ;;  %v624_v38 = vmul.f32 %v1497_v48, %v1492_v55 }
 0x2bc   : > { %v775_v5 = vpop.permute.xlu1 %774 }
 0x2bd   : > { %875 = vst [vmem:[%s1519_s10 + $0x10] sm:$0xff] %v859_v46  ;;  %v844_v28 = vmul.f32 %v1507_v31, %v775_v5  ;;  %v640_v18 = vadd.f32 %v624_v38, %v396_v21 }
 0x2bf   : > { %v860_v25 = vadd.f32 %v844_v28, %v632_v52  ;;  %v639_v28 = vadd.f32 %v623_v37, %v395_v43 }
 0x2c0   : > { %v785_v17 = vpop.permute.xlu1 %784  ;;  %v780_v29 = vpop.permute.xlu0 %779 }
 0x2c1   : > { %876 = vst [vmem:[%s1519_s10 + $0x18] sm:$0xff] %v860_v25  ;;  %v846_v51 = vmul.f32 %v1507_v31, %v785_v17  ;;  %v845_v16 = vmul.f32 %v1507_v31, %v780_v29 }
 0x2c3   : > { %v862_v30 = vadd.f32 %v846_v51, %v634_v54  ;;  %v861_v0 = vadd.f32 %v845_v16, %v633_v27  ;;  %v641_v27 = vadd.f32 %v625_v49, %v397_v9  ;;  %v642_v54 = vadd.f32 %v626_v50, %v398_v14 }
 0x2c4   : > { %v795_v2 = vpop.permute.xlu1 %794  ;;  %v790_v3 = vpop.permute.xlu0 %789  ;;  %v400_v51 = vadd.f32 %v384_v34, %v1503_v59 }
 0x2c5   : > { %878 = vst [vmem:[%s1519_s10 + $0x28] sm:$0xff] %v862_v30  ;;  %877 = vst [vmem:[%s1519_s10 + $0x20] sm:$0xff] %v861_v0  ;;  %v848_v22 = vmul.f32 %v1507_v31, %v795_v2  ;;  %v847_v41 = vmul.f32 %v1507_v31, %v790_v3 }
 0x2c6   : > { %v644_v61 = vadd.f32 %v628_v60, %v400_v51 }
 0x2c7   : > { %v864_v10 = vadd.f32 %v848_v22, %v636_v7  ;;  %v863_v11 = vadd.f32 %v847_v41, %v635_v53 }
 0x2c8   : > { %v805_v6 = vpop.permute.xlu1 %804  ;;  %v800_v35 = vpop.permute.xlu0 %799 }
 0x2c9   : > { %880 = vst [vmem:[%s1519_s10 + $0x38] sm:$0xff] %v864_v10  ;;  %879 = vst [vmem:[%s1519_s10 + $0x30] sm:$0xff] %v863_v11  ;;  %v850_v26 = vmul.f32 %v1507_v31, %v805_v6  ;;  %v849_v47 = vmul.f32 %v1507_v31, %v800_v35 }
 0x2cb   : > { %v866_v46 = vadd.f32 %v850_v26, %v638_v13  ;;  %v865_v55 = vadd.f32 %v849_v47, %v637_v12 }
 0x2cc   : > { %v815_v5 = vpop.permute.xlu1 %814  ;;  %v810_v52 = vpop.permute.xlu0 %809 }
 0x2cd   : > { %882 = vst [vmem:[%s1519_s10 + $0x48] sm:$0xff] %v866_v46  ;;  %881 = vst [vmem:[%s1519_s10 + $0x40] sm:$0xff] %v865_v55  ;;  %v852_v32 = vmul.f32 %v1507_v31, %v815_v5  ;;  %v851_v19 = vmul.f32 %v1507_v31, %v810_v52 }
 0x2cf   : > { %v868_v56 = vadd.f32 %v852_v32, %v640_v18  ;;  %v867_v25 = vadd.f32 %v851_v19, %v639_v28 }
 0x2d0   : > { %v825_v17 = vpop.permute.xlu1 %824  ;;  %v820_v29 = vpop.permute.xlu0 %819 }
 0x2d1   : > { %884 = vst [vmem:[%s1519_s10 + $0x58] sm:$0xff] %v868_v56  ;;  %883 = vst [vmem:[%s1519_s10 + $0x50] sm:$0xff] %v867_v25  ;;  %v854_v39 = vmul.f32 %v1507_v31, %v825_v17  ;;  %v853_v23 = vmul.f32 %v1507_v31, %v820_v29 }
 0x2d3   : > { %v870_v16 = vadd.f32 %v854_v39, %v642_v54  ;;  %v869_v20 = vadd.f32 %v853_v23, %v641_v27 }
 0x2d4   : > { %v835_v40 = vpop.permute.xlu1 %834  ;;  %v830_v48 = vpop.permute.xlu0 %829 }
 0x2d5   : > { %886 = vst [vmem:[%s1519_s10 + $0x68] sm:$0xff] %v870_v16  ;;  %885 = vst [vmem:[%s1519_s10 + $0x60] sm:$0xff] %v869_v20  ;;  %v856_v62 = vmul.f32 %v1507_v31, %v835_v40  ;;  %v855_v63 = vmul.f32 %v1507_v31, %v830_v48 }
 0x2d7   : > { %v872_v59 = vadd.f32 %v856_v62, %v644_v61  ;;  %v871_v30 = vadd.f32 %v855_v63, %v643_v58 }
 0x2d9   : > { %888 = vst [vmem:[%s1519_s10 + $0x78] sm:$0xff] %v872_v59  ;;  %887 = vst [vmem:[%s1519_s10 + $0x70] sm:$0xff] %v871_v30 }
 0x2da   : > { %1044 = shalt.err (!%p1041_p3)
}
 0x2db   : > { %s1045_s29 = scalar_lea.hbm %s1620_s24, 2048  ;;  %s1049_s5 = scalar_lea.hbm %s1671_s3, 4096 }
 0x2dc   : > { %p1046_p4 = scmp.ne.s32.totalorder %s1620_s24, %s1045_s29  ;;  %p1050_p9 = scmp.lt.s32.totalorder %s1620_s24, %s1671_s3 }
 0x2dd   : > { %p1051_p10 = scmp.lt.s32.totalorder %s1049_s5, %s1045_s29 }
 0x2de   : > { %p1047_p7 = pnand %p1046_p4, %p1159_p5 }
 0x2df   : > { %p1052_p11 = por %p1051_p10, %p1050_p9 }
 0x2e0   : > { %p1048_p8 = pneg %p1047_p7 }
 0x2e2   : > { %p1053_p12 = pnand %p1052_p11, %p1048_p8 }
 0x2e4   : > { %1056 = shalt.err (!%p1053_p12)
}
 0x2e5   : > { %s1099_s8 = smov 128   ;;  %s1100_s9 = smov 8  }
 0x2e6   : > { %979 = dma.vmem_to_hbm [thread:$0]  (%p1159_p5), %s1622_s17, 2048, %s1620_s24, %s1628_s16, %s1099_s8, %s1099_s8, %s1100_s9  }
 0x2e7 PF: > { %p985_p13 = scmp.ge.s32.totalorder %s1091_s15, 2  ;;  %s918_s10 = sand.u32 1, %s1079_s12  }
 0x2e8   : > { %s919_s11 = scalar_lea.sflag [#allocation3], %s918_s10 }
 0x2e9   : > { %p982_p0 = pnand %p985_p13, %p1163_p6 }
 0x2eb   : > { %p983_p1 = pneg %p982_p0 }
 0x2ed   : > { %1074 = dma.done.wait (%p983_p1), %s919_s11, 2048  }
 0x2ee   : > { %1076 = vsyncadd (%p983_p1), %s919_s11, 4294965248  ;;  %p13_p2 = scmp.ge.s32.totalorder %s1146_s18, 4   ;;  %s1674_s12 = smov %s1083_s13 }
 0x2ef   : > { %s1675_s13 = smov %s1087_s14  ;;  %s1676_s14 = smov %s1157_s21 }
 0x2f0   : > { %s1677_s15 = smov %s1146_s18  ;;  %15 = sbr.rel (!%p13_p2) target bundleno = 3 (0x3), region = 67 }
 0x2f5   :  { %924 = vsyncpa [#allocation3], 1 }
 0x2f6   :  { %926 = vsyncpa [#allocation3 + $0x1], 1 }

</bundles_post_ra>
